<compile_context>
chip_gen: v7x
topology: tpu7x:2x2x1
jax: 0.10.0
libtpu: 0.0.40
codegen_flags: <defaults>
</compile_context>

<pallas_src>
import functools

import jax
import jax.numpy as jnp
from jax.experimental import pallas as pl
from jax.experimental.pallas import tpu as pltpu

IN_F = 28 * 28 * 1      # 784 input features (full last dim, no padding needed)
HID = 120
HID_PAD = 128           # hidden padded 120 -> 128 (zero-filled, lane-dense)
OUT = 10                # output kept at its true width (slim writeback)


def _round_up(x, m):
    return (x + m - 1) // m * m


def _mlp_softmax_kernel(x_ref, w1_ref, b1_ref, w2_ref, b2_ref, o_ref):
    # x arrives as f32 straight from HBM; cast to bf16 in VMEM for the MXU.
    x = x_ref[...].astype(jnp.bfloat16)                              # (TB, 784)
    # fc1: (TB, 784) @ (784, 128) -> f32 accumulator; bias + relu in f32.
    h = jnp.dot(x, w1_ref[...], preferred_element_type=jnp.float32)
    h = jnp.maximum(h + b1_ref[...], 0.0)                            # (TB, 128)
    # fc2: (TB, 128) @ (128, 10) -> f32; padded hidden rows of w2 are zero.
    logits = jnp.dot(h.astype(jnp.bfloat16), w2_ref[...],
                     preferred_element_type=jnp.float32) + b2_ref[...]
    # numerically stable softmax over the 10 real classes.
    m = jnp.max(logits, axis=1, keepdims=True)
    e = jnp.exp(logits - m)
    denom = jnp.sum(e, axis=1, keepdims=True)
    o_ref[...] = (e * pl.reciprocal(denom, approx=True)).astype(o_ref.dtype)


def prepare_params(w1, b1, w2, b2, matmul_dtype=jnp.bfloat16):
    """Pad/cast parameters once (outside the per-call path).

    w1: (784, 120), b1: (120,), w2: (120, 10), b2: (10,)   [x @ W + b layout]
    """
    w1p = (jnp.zeros((IN_F, HID_PAD), matmul_dtype)
           .at[:, :HID].set(w1.astype(matmul_dtype)))                # (784, 128)
    b1p = (jnp.zeros((1, HID_PAD), jnp.float32)
           .at[0, :HID].set(b1.astype(jnp.float32)))                 # (1, 128)
    w2p = (jnp.zeros((HID_PAD, OUT), matmul_dtype)
           .at[:HID, :].set(w2.astype(matmul_dtype)))                # (128, 10)
    b2p = b2.astype(jnp.float32).reshape(1, OUT)                     # (1, 10)
    return w1p, b1p, w2p, b2p


@functools.partial(jax.jit, static_argnames=("block_b",))
def cs21b059_forward(x_nchw, w1p, b1p, w2p, b2p, *, block_b=1024):
    """x_nchw: (B, 1, 28, 28) -> (B, 10) softmax probabilities (float32)."""
    B = x_nchw.shape[0]
    x_flat = x_nchw.reshape(B, -1)            # torch.flatten(x, 1); stays f32

    # Only round the batch up to a multiple of 8 (sublane rule) when needed;
    # no padding up to a multiple of the tile -- the last grid block is ragged.
    b8 = _round_up(B, 8)
    if b8 != B:
        x_flat = jnp.zeros((b8, IN_F), x_flat.dtype).at[:B].set(x_flat)

    # Batch tile: <= block_b rows, and >=2 grid steps whenever the batch allows
    # (keeps both v7x TensorCores busy via the "parallel" batch axis).
    tb = min(block_b, _round_up(pl.cdiv(b8, 2), 8))
    tb = max(8, min(tb, b8))
    grid = (pl.cdiv(b8, tb),)

    out = pl.pallas_call(
        _mlp_softmax_kernel,
        out_shape=jax.ShapeDtypeStruct((b8, OUT), jnp.float32),
        grid=grid,
        in_specs=[
            pl.BlockSpec((tb, IN_F), lambda i: (i, 0)),          # x: tiled over batch
            pl.BlockSpec((IN_F, HID_PAD), lambda i: (0, 0)),     # w1: resident
            pl.BlockSpec((1, HID_PAD), lambda i: (0, 0)),        # b1: resident
            pl.BlockSpec((HID_PAD, OUT), lambda i: (0, 0)),      # w2: resident
            pl.BlockSpec((1, OUT), lambda i: (0, 0)),            # b2: resident
        ],
        out_specs=pl.BlockSpec((tb, OUT), lambda i: (i, 0)),
        compiler_params=pltpu.CompilerParams(
            dimension_semantics=("parallel",)),
    )(x_flat, w1p, b1p, w2p, b2p)

    return out[:B]          # row slice only; no column slice needed anymore


def init_params(key):
    """nn.Linear-style init (uniform +/- 1/sqrt(fan_in)), stored as (in, out)."""
    k1, k2, k3, k4 = jax.random.split(key, 4)
    lim1 = 1.0 / jnp.sqrt(jnp.float32(IN_F))
    lim2 = 1.0 / jnp.sqrt(jnp.float32(HID))
    w1 = jax.random.uniform(k1, (IN_F, HID), jnp.float32, -lim1, lim1)
    b1 = jax.random.uniform(k2, (HID,), jnp.float32, -lim1, lim1)
    w2 = jax.random.uniform(k3, (HID, OUT), jnp.float32, -lim2, lim2)
    b2 = jax.random.uniform(k4, (OUT,), jnp.float32, -lim2, lim2)
    return w1, b1, w2, b2


def _reference(x_nchw, w1, b1, w2, b2):
    xf = x_nchw.reshape(x_nchw.shape[0], -1)
    h = jnp.maximum(xf @ w1 + b1, 0.0)
    return jax.nn.softmax(h @ w2 + b2, axis=1)


if __name__ == "__main__":
    key = jax.random.PRNGKey(0)
    kx, kp = jax.random.split(key)
    # small MNIST-like batch: (B=2, C=1, H=28, W=28)
    x = jax.random.normal(kx, (2, 1, 28, 28), jnp.float32)
    w1, b1, w2, b2 = init_params(kp)
    params = prepare_params(w1, b1, w2, b2)

    out = cs21b059_forward(x, *params)
    out = jax.block_until_ready(out)

    assert out.shape == (2, 10)
    # softmax rows sum to ~1 (loose tolerance: bf16 matmuls + approx reciprocal)
    assert jnp.allclose(jnp.sum(out, axis=1), 1.0, atol=2e-2)
    ref = _reference(x, w1, b1, w2, b2)
    assert jnp.allclose(out, ref, atol=3e-2)
    print("KERNEL_OK")
</pallas_src>

<mosaic_0001>
module attributes {stable_mosaic.version = 11 : i64} {
  func.func @_mlp_softmax_kernel(%arg0: i32, %arg1: memref<8x784xf32, #tpu.memory_space<vmem>>, %arg2: memref<784x128xbf16, #tpu.memory_space<vmem>>, %arg3: memref<1x128xf32, #tpu.memory_space<vmem>>, %arg4: memref<128x10xbf16, #tpu.memory_space<vmem>>, %arg5: memref<1x10xf32, #tpu.memory_space<vmem>>, %arg6: memref<8x10xf32, #tpu.memory_space<vmem>>) attributes {dimension_semantics = [#tpu.dimension_semantics<parallel>], iteration_bounds = array<i64: 1>, scalar_prefetch = 0 : i64, scratch_operands = 0 : i64, tpu.core_type = #tpu.core_type<tc>, window_params = [{transform_indices = @transform_0, window_bounds = array<i64: 8, 784>}, {pipeline_mode = #tpu.pipeline_mode<synchronous>, transform_indices = @transform_1, window_bounds = array<i64: 784, 128>}, {pipeline_mode = #tpu.pipeline_mode<synchronous>, transform_indices = @transform_2, window_bounds = array<i64: 1, 128>}, {pipeline_mode = #tpu.pipeline_mode<synchronous>, transform_indices = @transform_3, window_bounds = array<i64: 128, 10>}, {pipeline_mode = #tpu.pipeline_mode<synchronous>, transform_indices = @transform_4, window_bounds = array<i64: 1, 10>}, {transform_indices = @transform_5, window_bounds = array<i64: 8, 10>}]} {
    %c0 = arith.constant 0 : index
    %c0_0 = arith.constant 0 : index
    %0 = vector.load %arg1[%c0, %c0_0] : memref<8x784xf32, #tpu.memory_space<vmem>>, vector<8x784xf32>
    %1 = arith.truncf %0 : vector<8x784xf32> to vector<8x784xbf16>
    %c0_1 = arith.constant 0 : index
    %c0_2 = arith.constant 0 : index
    %2 = vector.load %arg2[%c0_1, %c0_2] : memref<784x128xbf16, #tpu.memory_space<vmem>>, vector<784x128xbf16>
    %cst = arith.constant dense<0.000000e+00> : vector<8x128xf32>
    %3 = tpu.matmul %1, %2, %cst {dimension_numbers = #tpu.dot_dimension_numbers<[1], [0], [0], [1], [0, 0, 1, 1], [], []>} : vector<8x784xbf16>, vector<784x128xbf16>, vector<8x128xf32> -> vector<8x128xf32>
    %c0_3 = arith.constant 0 : index
    %c0_4 = arith.constant 0 : index
    %4 = vector.load %arg3[%c0_3, %c0_4] : memref<1x128xf32, #tpu.memory_space<vmem>>, vector<1x128xf32>
    %5 = vector.broadcast %4 : vector<1x128xf32> to vector<8x128xf32>
    %6 = arith.addf %3, %5 : vector<8x128xf32>
    %cst_5 = arith.constant 0.000000e+00 : f32
    %7 = vector.broadcast %cst_5 : f32 to vector<8x128xf32>
    %8 = arith.maximumf %6, %7 : vector<8x128xf32>
    %9 = arith.truncf %8 : vector<8x128xf32> to vector<8x128xbf16>
    %c0_6 = arith.constant 0 : index
    %c0_7 = arith.constant 0 : index
    %10 = vector.load %arg4[%c0_6, %c0_7] : memref<128x10xbf16, #tpu.memory_space<vmem>>, vector<128x10xbf16>
    %cst_8 = arith.constant dense<0.000000e+00> : vector<8x10xf32>
    %11 = tpu.matmul %9, %10, %cst_8 {dimension_numbers = #tpu.dot_dimension_numbers<[1], [0], [0], [1], [0, 0, 1, 1], [], []>} : vector<8x128xbf16>, vector<128x10xbf16>, vector<8x10xf32> -> vector<8x10xf32>
    %c0_9 = arith.constant 0 : index
    %c0_10 = arith.constant 0 : index
    %12 = vector.load %arg5[%c0_9, %c0_10] : memref<1x10xf32, #tpu.memory_space<vmem>>, vector<1x10xf32>
    %13 = vector.broadcast %12 : vector<1x10xf32> to vector<8x10xf32>
    %14 = arith.addf %11, %13 : vector<8x10xf32>
    %cst_11 = arith.constant dense<0xFF800000> : vector<8xf32>
    %15 = vector.multi_reduction <maximumf>, %14, %cst_11 [1] : vector<8x10xf32> to vector<8xf32>
    %16 = vector.shape_cast %15 : vector<8xf32> to vector<8x1xf32>
    %17 = vector.broadcast %16 : vector<8x1xf32> to vector<8x10xf32>
    %18 = arith.subf %14, %17 : vector<8x10xf32>
    %19 = math.exp %18 : vector<8x10xf32>
    %cst_12 = arith.constant dense<0.000000e+00> : vector<8xf32>
    %20 = vector.multi_reduction <add>, %19, %cst_12 [1] : vector<8x10xf32> to vector<8xf32>
    %21 = vector.shape_cast %20 : vector<8xf32> to vector<8x1xf32>
    %22 = tpu.reciprocal %21 {approx = true} : vector<8x1xf32> -> vector<8x1xf32>
    %23 = vector.broadcast %22 : vector<8x1xf32> to vector<8x10xf32>
    %24 = arith.mulf %19, %23 : vector<8x10xf32>
    %c0_13 = arith.constant 0 : index
    %c0_14 = arith.constant 0 : index
    %25 = vector.load %arg6[%c0_13, %c0_14] : memref<8x10xf32, #tpu.memory_space<vmem>>, vector<8x10xf32>
    tpu.vector_store %arg6[%c0_13, %c0_14], %24 {strides = array<i32>} : memref<8x10xf32, #tpu.memory_space<vmem>>, vector<8x10xf32>,
    return
  }
  func.func @transform_0(%arg0: i32) -> (i32, i32) {
    %c0_i32 = arith.constant 0 : i32
    %c0_i32_0 = arith.constant 0 : i32
    return %arg0, %c0_i32 : i32, i32
  }
  func.func @transform_1(%arg0: i32) -> (i32, i32) {
    %c0_i32 = arith.constant 0 : i32
    %c0_i32_0 = arith.constant 0 : i32
    %c0_i32_1 = arith.constant 0 : i32
    return %c0_i32, %c0_i32_0 : i32, i32
  }
  func.func @transform_2(%arg0: i32) -> (i32, i32) {
    %c0_i32 = arith.constant 0 : i32
    %c0_i32_0 = arith.constant 0 : i32
    %c0_i32_1 = arith.constant 0 : i32
    return %c0_i32, %c0_i32_0 : i32, i32
  }
  func.func @transform_3(%arg0: i32) -> (i32, i32) {
    %c0_i32 = arith.constant 0 : i32
    %c0_i32_0 = arith.constant 0 : i32
    %c0_i32_1 = arith.constant 0 : i32
    return %c0_i32, %c0_i32_0 : i32, i32
  }
  func.func @transform_4(%arg0: i32) -> (i32, i32) {
    %c0_i32 = arith.constant 0 : i32
    %c0_i32_0 = arith.constant 0 : i32
    %c0_i32_1 = arith.constant 0 : i32
    return %c0_i32, %c0_i32_0 : i32, i32
  }
  func.func @transform_5(%arg0: i32) -> (i32, i32) {
    %c0_i32 = arith.constant 0 : i32
    %c0_i32_0 = arith.constant 0 : i32
    return %arg0, %c0_i32 : i32, i32
  }
}

</mosaic_0001>

<bundles_post_ra>
// kernel: cs21b059_forward.1
= control target key start
LH: loop header
LB: loop body
LE: loop exit
PB: predicated region body
PF: predicated region fallthrough
CT: control target
= control target key end

     0   :  { %10 = vsyncpa [#allocation3], 0  ;;  %s996_s18 = smov [#allocation2]   ;;  %s1113_s0 = inlined_call_operand.vmem [shape: f32[8,784], index: 0, kind: input, shape index: {}]   ;;  %s1114_s1 = inlined_call_operand.hbm [shape: bf16[784,128], index: 1, kind: input, shape index: {}]   ;;  %s1115_s2 = inlined_call_operand.vmem [shape: f32[1,128], index: 2, kind: input, shape index: {}]   ;;  %s1116_s3 = inlined_call_operand.vmem [shape: bf16[128,10], index: 3, kind: input, shape index: {}]   ;;  %s1117_s4 = inlined_call_operand.vmem [shape: f32[1,10], index: 4, kind: input, shape index: {}]   ;;  %s1118_s5 = inlined_call_operand.vmem [shape: f32[8,10], index: 5, kind: output, shape index: {}]  }
   0x1   :  { %s18_s19 = sshll.u32 %s996_s18, 4  ;;  %s972_s22 = scalar_lea.hbm %s1114_s1, 6272  ;;  %s19_s19 = int_to_ptr.vmem [resolvable:$true] %s18_s19 }
   0x2   :  { %p973_p0 = scmp.ne.s32.totalorder %s1114_s1, %s972_s22  ;;  %p976_p1 = scmp.lt.u32.totalorder %s972_s22, %s1114_s1 }
   0x4   :  { %p978_p2 = pnand %p976_p1, %p973_p0 }
   0x6   :  { %981 = shalt.err (!%p978_p2)
}
   0x7   :  { %s982_s27 = scalar_lea.vmem %s19_s19, 6272  ;;  %p987_p4 = scmp.lt.s32.totalorder %s19_s19, %s19_s19 }
   0x8   :  { %p983_p3 = scmp.ne.s32.totalorder %s19_s19, %s982_s27  ;;  %p988_p5 = scmp.lt.s32.totalorder %s982_s27, %s982_s27 }
   0xa   :  { %p989_p6 = por %p988_p5, %p987_p4 }
   0xc   :  { %p990_p7 = pnand %p989_p6, %p983_p3 }
   0xe   :  { %993 = shalt.err (!%p990_p7)
}
   0xf   :  { %s997_s28 = smov 64   ;;  %s998_s29 = smov 4  }
  0x10   :  { %24 = dma.hbm_to_vmem [thread:$0]  %s1114_s1, 6272, %s19_s19, [#allocation3], %s997_s28, %s997_s28, %s998_s29  }
  0x11   :  { %994 = dma.done.wait [#allocation3], 6272  }
  0x12   :  { %995 = vsyncadd [#allocation3], 4294961024  ;;  %v911_v0 = vld [vmem:[#allocation2 + $0x40] sm:$0xff]   ;;  %v915_v4 = vld [vmem:[#allocation2 + $0x48] sm:$0xff]   ;;  %v999_v44 = vmov 0.0   ;;  %vm1000_vm0 = vmmov 0  }
  0x13   :  { %v912_v1 = vld [vmem:[#allocation2] sm:$0xff]   ;;  %803 = vmatprep.subr.bf16.mxu0 %v911_v0  ;;  %v916_v5 = vld [vmem:[#allocation2 + $0x8] sm:$0xff]   ;;  %v919_v8 = vld [vmem:[#allocation2 + $0x50] sm:$0xff]   ;;  %vm448_vm1 = vcmask 130048   ;;  %vm725_vm2 = vcmask 80896  }
  0x14   :  { %v913_v2 = vld [vmem:[#allocation2 + $0xc0] sm:$0xff]   ;;  %804 = vmatpush3.bf16.msra.mxu0 %v912_v1  ;;  %v917_v6 = vld [vmem:[#allocation2 + $0xc8] sm:$0xff]   ;;  %v920_v9 = vld [vmem:[#allocation2 + $0x10] sm:$0xff]  }
  0x15   :  { %v914_v3 = vld [vmem:[#allocation2 + $0x80] sm:$0xff]   ;;  %825 = vmatprep.subr.bf16.mxu1 %v913_v2  ;;  %805 = vmatprep.subr.bf16.mxu0 %v915_v4  ;;  %v918_v7 = vld [vmem:[#allocation2 + $0x88] sm:$0xff]   ;;  %v921_v10 = vld [vmem:[#allocation2 + $0xd0] sm:$0xff]  }
  0x16   :  { %826 = vmatpush3.bf16.msra.mxu1 %v914_v3  ;;  %v922_v11 = vld [vmem:[#allocation2 + $0x90] sm:$0xff]   ;;  %v923_v12 = vld [vmem:[#allocation2 + $0x58] sm:$0xff]   ;;  %v927_v16 = vld [vmem:[#allocation2 + $0x60] sm:$0xff]  }
  0x17   :  { %827 = vmatprep.subr.bf16.mxu1 %v917_v6  ;;  %v924_v13 = vld [vmem:[#allocation2 + $0x18] sm:$0xff]   ;;  %v928_v17 = vld [vmem:[#allocation2 + $0x20] sm:$0xff]   ;;  %v931_v20 = vld [vmem:[#allocation2 + $0x68] sm:$0xff]  }
  0x18   :  { %806 = vmatpush3.bf16.msra.mxu0 %v916_v5  ;;  %v925_v14 = vld [vmem:[#allocation2 + $0xd8] sm:$0xff]   ;;  %v929_v18 = vld [vmem:[#allocation2 + $0xe0] sm:$0xff]   ;;  %v932_v21 = vld [vmem:[#allocation2 + $0x28] sm:$0xff]  }
  0x19   :  { %807 = vmatprep.subr.bf16.mxu0 %v919_v8  ;;  %v926_v15 = vld [vmem:[#allocation2 + $0x98] sm:$0xff]   ;;  %v930_v19 = vld [vmem:[#allocation2 + $0xa0] sm:$0xff]   ;;  %v933_v22 = vld [vmem:[#allocation2 + $0xe8] sm:$0xff]  }
  0x1a   :  { %828 = vmatpush3.bf16.msra.mxu1 %v918_v7  ;;  %v934_v23 = vld [vmem:[#allocation2 + $0xa8] sm:$0xff]   ;;  %v935_v24 = vld [vmem:[#allocation2 + $0x70] sm:$0xff]   ;;  %v939_v28 = vld [vmem:[#allocation2 + $0x78] sm:$0xff]  }
  0x1b   :  { %829 = vmatprep.subr.bf16.mxu1 %v921_v10  ;;  %v936_v25 = vld [vmem:[#allocation2 + $0x30] sm:$0xff]   ;;  %v940_v29 = vld [vmem:[#allocation2 + $0x38] sm:$0xff]   ;;  %v36_v31 = vld [vmem:[%s1113_s0 + $0x8] sm:$0xff] }
  0x1c   :  { %808 = vmatpush3.bf16.msra.mxu0 %v920_v9  ;;  %v937_v26 = vld [vmem:[#allocation2 + $0xf0] sm:$0xff]   ;;  %v941_v30 = vld [vmem:[#allocation2 + $0xf8] sm:$0xff]   ;;  %v43_v32 = vpack.c.bf16 %v36_v31, %v36_v31  ;;  %v35_v34 = vld [vmem:[%s1113_s0] sm:$0xff] }
  0x1d   :  { %809 = vmatprep.subr.bf16.mxu0 %v923_v12  ;;  %v938_v27 = vld [vmem:[#allocation2 + $0xb0] sm:$0xff]   ;;  %v942_v33 = vld [vmem:[#allocation2 + $0xb8] sm:$0xff]   ;;  %v42_v35 = vpack.c.bf16 %v35_v34, %v35_v34  ;;  %v943_v36 = vld [vmem:[#allocation2 + $0x140] sm:$0xff]  }
  0x1e   :  { %830 = vmatpush3.bf16.msra.mxu1 %v922_v11  ;;  %v38_v37 = vld [vmem:[%s1113_s0 + $0x18] sm:$0xff]  ;;  %484 = vmatprep.mubr.bf16.mxu0 %v43_v32  ;;  %v944_v39 = vld [vmem:[#allocation2 + $0x100] sm:$0xff]   ;;  %v37_v40 = vld [vmem:[%s1113_s0 + $0x10] sm:$0xff] }
  0x1f   :  { %831 = vmatprep.subr.bf16.mxu1 %v925_v14  ;;  %v45_v38 = vpack.c.bf16 %v38_v37, %v38_v37  ;;  %v44_v41 = vpack.c.bf16 %v37_v40, %v37_v40  ;;  %v945_v42 = vld [vmem:[#allocation2 + $0x148] sm:$0xff]   ;;  %v947_v45 = vld [vmem:[#allocation2 + $0x150] sm:$0xff]   ;;  %v949_v47 = vld [vmem:[#allocation2 + $0x158] sm:$0xff]  }
  0x20   :  { %810 = vmatpush3.bf16.msra.mxu0 %v924_v13  ;;  %v946_v43 = vld [vmem:[#allocation2 + $0x108] sm:$0xff]   ;;  %v948_v46 = vld [vmem:[#allocation2 + $0x110] sm:$0xff]   ;;  %v950_v48 = vld [vmem:[#allocation2 + $0x118] sm:$0xff]  }
  0x21   :  { %811 = vmatprep.subr.bf16.mxu0 %v927_v16  ;;  %524 = vmatprep.mubr.bf16.mxu1 %v45_v38  ;;  %v951_v49 = vld [vmem:[#allocation2 + $0x160] sm:$0xff]   ;;  %v953_v51 = vld [vmem:[#allocation2 + $0x168] sm:$0xff]   ;;  %v955_v55 = vld [vmem:[#allocation2 + $0x170] sm:$0xff]  }
  0x22   :  { %832 = vmatpush3.bf16.msra.mxu1 %v926_v15  ;;  %v952_v50 = vld [vmem:[#allocation2 + $0x120] sm:$0xff]   ;;  %v954_v52 = vld [vmem:[#allocation2 + $0x128] sm:$0xff]   ;;  %v41_v57 = vld [vmem:[%s1113_s0 + $0x30] sm:$0xff] }
  0x23   :  { %833 = vmatprep.subr.bf16.mxu1 %v929_v18  ;;  %v959_v53 = vld [vmem:[#allocation2 + $0x180] sm:$0xff]   ;;  %v40_v54 = vld [vmem:[%s1113_s0 + $0x28] sm:$0xff]  ;;  %v48_v58 = vpack.c.bf16 %v41_v57, %v41_v57  ;;  %v956_v59 = vld [vmem:[#allocation2 + $0x130] sm:$0xff]  }
  0x24   :  { %812 = vmatpush3.bf16.msra.mxu0 %v928_v17  ;;  %v47_v56 = vpack.c.bf16 %v40_v54, %v40_v54  ;;  %v957_v60 = vld [vmem:[#allocation2 + $0x178] sm:$0xff]   ;;  %v39_v62 = vld [vmem:[%s1113_s0 + $0x20] sm:$0xff]  ;;  %v961_v1 = vld [vmem:[%s1116_s3 + $0x8] sm:$0xff]  }
  0x25   :  { %813 = vmatprep.subr.bf16.mxu0 %v931_v20  ;;  %v958_v61 = vld [vmem:[#allocation2 + $0x138] sm:$0xff]   ;;  %v46_v63 = vpack.c.bf16 %v39_v62, %v39_v62  ;;  %v960_v0 = vld [vmem:[%s1116_s3] sm:$0xff]   ;;  %v962_v2 = vld [vmem:[%s1116_s3 + $0x10] sm:$0xff]  }
  0x26   :  { %834 = vmatpush3.bf16.msra.mxu1 %v930_v19  ;;  %v963_v3 = vld [vmem:[%s1116_s3 + $0x18] sm:$0xff]   ;;  %v964_v4 = vld [vmem:[%s1116_s3 + $0x20] sm:$0xff]   ;;  %v965_v5 = vld [vmem:[%s1116_s3 + $0x28] sm:$0xff]  }
  0x27   :  { %835 = vmatprep.subr.bf16.mxu1 %v933_v22  ;;  %v966_v6 = vld [vmem:[%s1116_s3 + $0x30] sm:$0xff]   ;;  %v967_v7 = vld [vmem:[%s1116_s3 + $0x38] sm:$0xff]   ;;  %v743_v9 = vld [vmem:[%s1115_s2] ss:$0 sm:$0xff] }
  0x28   :  { %814 = vmatpush3.bf16.msra.mxu0 %v932_v21  ;;  %v794_v34 = vld [vmem:[%s1117_s4] ss:$0 sm:$0xff] }
  0x29   :  { %815 = vmatprep.subr.bf16.mxu0 %v935_v24 }
  0x2a   :  { %836 = vmatpush3.bf16.msra.mxu1 %v934_v23 }
  0x2b   :  { %837 = vmatprep.subr.bf16.mxu1 %v937_v26 }
  0x2c   :  { %816 = vmatpush3.bf16.msra.mxu0 %v936_v25 }
  0x2d   :  { %817 = vmatprep.subr.bf16.mxu0 %v939_v28 }
  0x2e   :  { %838 = vmatpush3.bf16.msra.mxu1 %v938_v27 }
  0x2f   :  { %839 = vmatprep.subr.bf16.mxu1 %v941_v30 }
  0x30   :  { %818 = vmatpush3.bf16.msra.mxu0 %v940_v29 }
  0x31   :  { %847 = vmatprep.subr.bf16.mxu0 %v943_v36 }
  0x32   :  { %840 = vmatpush3.bf16.msra.mxu1 %v942_v33 }
  0x33   :  { %485 = vmatmul.mubr.bf16.vlgmr.msra.gmra.mrb[0].mxu0 %v42_v35  ;;  %880 = vmatprep.subr.bf16.mxu1 %v999_v44 }
  0x34   :  { %848 = vmatpush3.bf16.msra.mxu0 %v944_v39  ;;  %564 = vmatprep.mubr.bf16.mxu0 %v47_v56 }
  0x35   :  { %525 = vmatmul.mubr.bf16.vlgmr.msra.gmra.mrb[0].mxu1 %v44_v41  ;;  %849 = vmatprep.subr.bf16.mxu0 %v945_v42 }
  0x36   :  { %882 = vmatprep.mubr.msk.bf16.mxu1 %vm1000_vm0, %v999_v44  ;;  %881 = vmatpush3.bf16.msra.mxu1 %v959_v53 }
  0x37   :  { %886 = vmatprep.subr.bf16.mxu1 %v999_v44 }
  0x38   :  { %850 = vmatpush3.bf16.msra.mxu0 %v946_v43 }
  0x39   :  { %851 = vmatprep.subr.bf16.mxu0 %v947_v45 }
  0x3c   :  { %852 = vmatpush3.bf16.msra.mxu0 %v948_v46 }
  0x3d   :  { %853 = vmatprep.subr.bf16.mxu0 %v949_v47  ;;  %883 = vmatmul.mubr.msk.bf16.vlgmr.msra.gmra.mrb[4].mxu1 %vm448_vm1, %v48_v58 }
  0x3e   :  { %902 = vmatprep.mubr.msk.bf16.mxu1 %vm1000_vm0, %v999_v44  ;;  %887 = vmatpush3.bf16.msra.mxu1 %v960_v0 }
  0x3f   :  { %888 = vmatprep.subr.bf16.mxu1 %v999_v44 }
  0x40   :  { %854 = vmatpush3.bf16.msra.mxu0 %v950_v48 }
  0x41   :  { %855 = vmatprep.subr.bf16.mxu0 %v951_v49 }
  0x42   :  { %889 = vmatpush3.bf16.msra.mxu1 %v961_v1 }
  0x43   :  { %890 = vmatprep.subr.bf16.mxu1 %v999_v44 }
  0x44   :  { %856 = vmatpush3.bf16.msra.mxu0 %v952_v50 }
  0x45   :  { %857 = vmatprep.subr.bf16.mxu0 %v953_v51 }
  0x46   :  { %891 = vmatpush3.bf16.msra.mxu1 %v962_v2 }
  0x47   :  { %892 = vmatprep.subr.bf16.mxu1 %v999_v44 }
  0x48   :  { %858 = vmatpush3.bf16.msra.mxu0 %v954_v52 }
  0x49   :  { %859 = vmatprep.subr.bf16.mxu0 %v955_v55 }
  0x4a   :  { %893 = vmatpush3.bf16.msra.mxu1 %v963_v3 }
  0x4b   :  { %894 = vmatprep.subr.bf16.mxu1 %v999_v44 }
  0x4c   :  { %860 = vmatpush3.bf16.msra.mxu0 %v956_v59 }
  0x4d   :  { %861 = vmatprep.subr.bf16.mxu0 %v957_v60 }
  0x4e   :  { %895 = vmatpush3.bf16.msra.mxu1 %v964_v4 }
  0x4f   :  { %896 = vmatprep.subr.bf16.mxu1 %v999_v44 }
  0x50   :  { %862 = vmatpush3.bf16.msra.mxu0 %v958_v61 }
  0x52   :  { %897 = vmatpush3.bf16.msra.mxu1 %v965_v5 }
  0x53   :  { %565 = vmatmul.mubr.bf16.vlgmr.msra.gmra.mrb[4].mxu0 %v46_v63  ;;  %898 = vmatprep.subr.bf16.mxu1 %v999_v44 }
  0x56   :  { %899 = vmatpush3.bf16.msra.mxu1 %v966_v6 }
  0x57   :  { %900 = vmatprep.subr.bf16.mxu1 %v999_v44 }
  0x5a   :  { %901 = vmatpush3.bf16.msra.mxu1 %v967_v7 }
 0x106   :  { %v819_v8 = vpop.f32.mrb[0].mxu0 }
 0x107   :  { %v820_v10 = vpop.f32.mrb[1].mxu0 }
 0x108   :  { %v821_v11 = vadd.f32 %v820_v10, %v819_v8  ;;  %v822_v12 = vpop.f32.mrb[2].mxu0  ;;  %v841_v13 = vpop.f32.mrb[0].mxu1 }
 0x109   :  { %v823_v14 = vpop.f32.mrb[3].mxu0  ;;  %v842_v16 = vpop.f32.mrb[1].mxu1 }
 0x10a   :  { %v487_v15 = vadd.f32 %v821_v11, %v743_v9  ;;  %v843_v17 = vadd.f32 %v842_v16, %v841_v13  ;;  %v844_v18 = vpop.f32.mrb[2].mxu1 }
 0x10b   :  { %v845_v19 = vpop.f32.mrb[3].mxu1 }
 0x10c   :  { %v527_v20 = vadd.f32 %v843_v17, %v487_v15 }
 0x110   :  { %v606_v21 = vpop.f32.mrb[4].mxu1 }
 0x111   :  { %v884_v22 = vpop.f32.mrb[5].mxu1 }
 0x112   :  { %v609_v23 = vpop.f32.mrb[6].mxu1 }
 0x113   :  { %v885_v24 = vpop.f32.mrb[7].mxu1 }
 0x126   :  { %v863_v25 = vpop.f32.mrb[4].mxu0 }
 0x127   :  { %v864_v26 = vpop.f32.mrb[5].mxu0 }
 0x128   :  { %v865_v27 = vadd.f32 %v864_v26, %v863_v25  ;;  %v866_v28 = vpop.f32.mrb[6].mxu0 }
 0x129   :  { %v867_v29 = vpop.f32.mrb[7].mxu0 }
 0x12a   :  { %v567_v30 = vadd.f32 %v865_v27, %v527_v20 }
 0x12c   :  { %v607_v31 = vadd.f32 %v606_v21, %v567_v30 }
 0x12e   :  { %v612_v32 = vmax.f32 %v607_v31, 0.0 }
 0x130   :  { %v613_v33 = vpack.c.bf16 %v612_v32, %v612_v32 }
 0x132   :  { %903 = vmatmul.mubr.bf16.vlgmr.msra.gmra.mrb[8].mxu1 %v613_v33 }
 0x205   :  { %v719_v35 = vpop.f32.mrb[8].mxu1 }
 0x206   :  { %v720_v36 = vadd.f32 %v794_v34, %v719_v35  ;;  %v904_v37 = vpop.f32.mrb[9].mxu1 }
 0x207   :  { %v722_v38 = vpop.f32.mrb[10].mxu1 }
 0x208   :  { %v905_v39 = vpop.f32.mrb[11].mxu1  ;;  %v726_v40 = vsel %vm725_vm2, %v720_v36, -inf }
 0x209   :  { %727 = vmax.xlane.f32.xlu0 %v726_v40 }
 0x296   :  { %v728_v41 = vpop.xlane.xlu0 %727 }
 0x297   :  { %v729_v42 = vsub.f32 %v720_v36, %v728_v41 }
 0x299   :  { %v730_v43 = vmul.f32 1.442695, %v729_v42 }
 0x29b   :  { %968 = vpow2.f32 %v730_v43 }
 0x2a5   :  { %v969_v44 = vpop.eup %968 }
 0x2a6   :  { %v732_v45 = vsel %vm725_vm2, %v969_v44, 0.0 }
 0x2a7   :  { %733 = vadd.xlane.f32.xlu0 %v732_v45 }
 0x334   :  { %v734_v46 = vpop.xlane.xlu0 %733 }
 0x335   :  { %970 = vrcp.f32 %v734_v46 }
 0x33f   :  { %v971_v47 = vpop.eup %970 }
 0x340   :  { %v736_v48 = vmul.f32 %v971_v47, %v969_v44 }
 0x342   :  { %737 = vst.msk [vmem:[%s1118_s5] sm:$0xff] %vm725_vm2, %v736_v48 }
 0x343   :  { %742 = vsyncpa [#allocation3], 1 }

</bundles_post_ra>
